<compile_context>
chip_gen: v5e
topology: v5e:2x2
jax: 0.10.0
libtpu: 0.0.40
codegen_flags: <defaults>
</compile_context>

<pallas_src>
import functools

import jax
import jax.numpy as jnp
from jax.experimental import pallas as pl
from jax.experimental.pallas import tpu as pltpu

_LANES = 128
_SUBLANES = 8
_CHUNK_ROWS = 256  # rows per in-kernel accumulation chunk (keeps live set small)


def _charbonnier_tile_kernel(x_ref, y_ref, out_ref, *, eps, rows_valid,
                             tile_rows, chunk):
    """One grid step: partial Charbonnier sum of a (tile_rows, 128) block.

    x_ref, y_ref: (tile_rows, 128) VMEM tiles of the inputs (native dtype)
    out_ref:      (8, 128) per-block partial sum (written once per step)

    rows_valid / tile_rows / chunk are static Python ints; the last block is
    masked in-kernel when rows_valid % tile_rows != 0 (no wrapper padding).
    """
    nchunks = tile_rows // chunk
    needs_mask = (rows_valid % tile_rows) != 0
    eps_f = jnp.float32(eps)
    block_row0 = pl.program_id(0) * tile_rows

    def body(c, acc):
        start = pl.multiple_of(c * chunk, chunk)
        xv = x_ref[pl.ds(start, chunk), :].astype(jnp.float32)
        yv = y_ref[pl.ds(start, chunk), :].astype(jnp.float32)
        d = xv - yv
        v = jnp.sqrt(d * d + eps_f)
        if needs_mask:
            # Rows of the (partial) last block that lie past the real array
            # contain unspecified data; drop them with a select (NaN-safe).
            gid = (block_row0 + start
                   + jax.lax.broadcasted_iota(jnp.int32, (chunk, _LANES), 0))
            v = jnp.where(gid < rows_valid, v, 0.0)
        # Layout-preserving fold chunk -> 8 sublanes with pure vreg adds.
        return acc + v.reshape(chunk // _SUBLANES, _SUBLANES, _LANES).sum(axis=0)

    acc = jax.lax.fori_loop(0, nchunks, body,
                            jnp.zeros((_SUBLANES, _LANES), jnp.float32))
    out_ref[...] = acc


def _generation_defaults():
    """(default tile_rows, vmem_limit_bytes) tuned per TPU generation."""
    try:
        kind = jax.devices()[0].device_kind.lower()
    except Exception:  # pragma: no cover - defensive
        kind = ""
    if "v7" in kind or "7x" in kind:
        # v7x: ~3.2 TB/s HBM but only 64 MiB VMEM/TC -> 8 MiB tiles, budgeted.
        return 16384, 44 * 1024 * 1024
    if "v6" in kind:
        # v6e: 4 MiB tiles, raise scoped VMEM past the 32 MiB default.
        return 8192, 40 * 1024 * 1024
    if "v5" in kind:
        # v5e: slower HBM, keep tiles modest; limit well under physical VMEM.
        return 4096, 24 * 1024 * 1024
    return 8192, 40 * 1024 * 1024


def charbonnier_loss(x: jax.Array, y: jax.Array, *, eps: float = 1e-6,
                     tile_rows: int | None = None) -> jax.Array:
    """sum(sqrt((x - y)^2 + eps)) computed with a Pallas TPU kernel (f32 scalar)."""
    assert x.shape == y.shape, "x and y must have the same shape"
    n = x.size
    xf = x.reshape(-1)
    yf = y.reshape(-1)

    rows_full = n // _LANES          # complete lane-dense rows
    rem = n - rows_full * _LANES     # trailing elements (< 128), rare in practice

    total = jnp.zeros((), jnp.float32)

    if rows_full > 0:
        n_main = rows_full * _LANES
        if rem:
            # Rare unaligned case: only the bulk prefix goes through the kernel.
            x2d = jax.lax.slice(xf, (0,), (n_main,)).reshape(rows_full, _LANES)
            y2d = jax.lax.slice(yf, (0,), (n_main,)).reshape(rows_full, _LANES)
        else:
            # Common case: pure metadata reshape, zero extra HBM traffic.
            x2d = xf.reshape(rows_full, _LANES)
            y2d = yf.reshape(rows_full, _LANES)

        desired, vmem_limit = _generation_defaults()
        if tile_rows is not None:
            desired = tile_rows

        # Sublane multiple for packed sub-32-bit dtypes (f32:8, bf16:16, int8:32).
        itemsize = jnp.dtype(x.dtype).itemsize
        sub = _SUBLANES * max(1, 4 // itemsize)

        # Cap the tile so there are >= 2 blocks (keeps v7x's 2nd TC busy),
        # then round to a packed-sublane / chunk-friendly multiple.
        cap = sub * (-(-rows_full // (2 * sub)))
        tr = max(sub, min(desired, cap))
        tr = -(-tr // sub) * sub                 # round up to sublane multiple
        if tr >= _CHUNK_ROWS:
            tr -= tr % _CHUNK_ROWS               # multiple of the chunk size
        chunk = min(_CHUNK_ROWS, tr)
        assert tr % chunk == 0 and chunk % _SUBLANES == 0

        num_blocks = -(-rows_full // tr)

        partials = pl.pallas_call(
            functools.partial(_charbonnier_tile_kernel, eps=eps,
                              rows_valid=rows_full, tile_rows=tr, chunk=chunk),
            out_shape=jax.ShapeDtypeStruct((num_blocks * _SUBLANES, _LANES),
                                           jnp.float32),
            grid_spec=pltpu.PrefetchScalarGridSpec(
                num_scalar_prefetch=0,
                grid=(num_blocks,),
                in_specs=[
                    pl.BlockSpec((tr, _LANES), lambda i: (i, 0)),
                    pl.BlockSpec((tr, _LANES), lambda i: (i, 0)),
                ],
                out_specs=pl.BlockSpec((_SUBLANES, _LANES), lambda i: (i, 0)),
            ),
            compiler_params=pltpu.CompilerParams(
                # Independent per-block partials: no carried state, so the
                # sweep can be sharded across v7x's two TensorCores.
                dimension_semantics=("parallel",),
                vmem_limit_bytes=vmem_limit,
            ),
        )(x2d, y2d)
        total = total + jnp.sum(partials)        # tiny final combine in XLA

    if rem:
        # Sub-128-element tail: trivial XLA sum, negligible cost.
        xt = jax.lax.slice(xf, (n - rem,), (n,)).astype(jnp.float32)
        yt = jax.lax.slice(yf, (n - rem,), (n,)).astype(jnp.float32)
        dt = xt - yt
        total = total + jnp.sum(jnp.sqrt(dt * dt + jnp.float32(eps)))

    return total


def _reference(x, y, eps=1e-6):
    d = x.astype(jnp.float32) - y.astype(jnp.float32)
    return jnp.sum(jnp.sqrt(d * d + jnp.float32(eps)))


if __name__ == "__main__":
    key = jax.random.PRNGKey(0)
    kx, ky, ku, kv = jax.random.split(key, 4)

    # Main check: lane-aligned image-like input (matches module usage).
    x = jax.random.normal(kx, (2, 4, 16, 16), dtype=jnp.float32)
    y = jax.random.normal(ky, (2, 4, 16, 16), dtype=jnp.float32)
    loss = jax.block_until_ready(charbonnier_loss(x, y))
    ref = _reference(x, y)
    assert jnp.allclose(loss, ref, rtol=1e-5, atol=1e-5), (loss, ref)

    # Secondary check: unaligned size exercises the in-kernel row mask and the
    # XLA tail path (no jnp.pad anywhere).
    u = jax.random.normal(ku, (3, 5, 131), dtype=jnp.float32)
    v = jax.random.normal(kv, (3, 5, 131), dtype=jnp.float32)
    loss2 = jax.block_until_ready(charbonnier_loss(u, v))
    ref2 = _reference(u, v)
    assert jnp.allclose(loss2, ref2, rtol=1e-5, atol=1e-4), (loss2, ref2)

    print("KERNEL_OK")
</pallas_src>

<mosaic_0001>
module attributes {stable_mosaic.version = 11 : i64} {
  func.func @_charbonnier_tile_kernel(%arg0: i32, %arg1: memref<8x128xf32, #tpu.memory_space<vmem>>, %arg2: memref<8x128xf32, #tpu.memory_space<vmem>>, %arg3: memref<8x128xf32, #tpu.memory_space<vmem>>) attributes {dimension_semantics = [#tpu.dimension_semantics<parallel>], iteration_bounds = array<i64: 2>, scalar_prefetch = 0 : i64, scratch_operands = 0 : i64, tpu.core_type = #tpu.core_type<tc>, window_params = [{transform_indices = @transform_0, window_bounds = array<i64: 8, 128>}, {transform_indices = @transform_1, window_bounds = array<i64: 8, 128>}, {transform_indices = @transform_2, window_bounds = array<i64: 8, 128>}]} {
    %cst = arith.constant 0.000000e+00 : f32
    %0 = vector.broadcast %cst : f32 to vector<8x128xf32>
    %cst_0 = arith.constant 9.99999997E-7 : f32
    %c0_i32 = arith.constant 0 : i32
    %c8_i32 = arith.constant 8 : i32
    %1 = arith.muli %c0_i32, %c8_i32 : i32
    %2 = tpu.assume_multiple %1, 8 : i32
    %3 = arith.index_cast %2 : i32 to index
    %c0 = arith.constant 0 : index
    %4 = vector.load %arg1[%3, %c0] : memref<8x128xf32, #tpu.memory_space<vmem>>, vector<8x128xf32>
    %5 = arith.index_cast %2 : i32 to index
    %c0_1 = arith.constant 0 : index
    %6 = vector.load %arg2[%5, %c0_1] : memref<8x128xf32, #tpu.memory_space<vmem>>, vector<8x128xf32>
    %7 = arith.subf %4, %6 : vector<8x128xf32>
    %8 = arith.mulf %7, %7 : vector<8x128xf32>
    %9 = vector.broadcast %cst_0 : f32 to vector<8x128xf32>
    %10 = arith.addf %8, %9 : vector<8x128xf32>
    %11 = math.sqrt %10 : vector<8x128xf32>
    %12 = vector.shape_cast %11 : vector<8x128xf32> to vector<1x8x128xf32>
    %cst_2 = arith.constant dense<0.000000e+00> : vector<8x128xf32>
    %13 = vector.multi_reduction <add>, %12, %cst_2 [0] : vector<1x8x128xf32> to vector<8x128xf32>
    %14 = arith.addf %0, %13 : vector<8x128xf32>
    %c1_i32 = arith.constant 1 : i32
    %c0_3 = arith.constant 0 : index
    %c0_4 = arith.constant 0 : index
    %15 = vector.load %arg3[%c0_3, %c0_4] : memref<8x128xf32, #tpu.memory_space<vmem>>, vector<8x128xf32>
    tpu.vector_store %arg3[%c0_3, %c0_4], %14 {strides = array<i32>} : memref<8x128xf32, #tpu.memory_space<vmem>>, vector<8x128xf32>,
    return
  }
  func.func @transform_0(%arg0: i32) -> (i32, i32) {
    %c0_i32 = arith.constant 0 : i32
    %c0_i32_0 = arith.constant 0 : i32
    return %arg0, %c0_i32 : i32, i32
  }
  func.func @transform_1(%arg0: i32) -> (i32, i32) {
    %c0_i32 = arith.constant 0 : i32
    %c0_i32_0 = arith.constant 0 : i32
    return %arg0, %c0_i32 : i32, i32
  }
  func.func @transform_2(%arg0: i32) -> (i32, i32) {
    %c0_i32 = arith.constant 0 : i32
    %c0_i32_0 = arith.constant 0 : i32
    return %arg0, %c0_i32 : i32, i32
  }
}

</mosaic_0001>

<bundles_post_ra>
// kernel: tpu_custom_call.1
= control target key start
LH: loop header
LB: loop body
LE: loop exit
PB: predicated region body
PF: predicated region fallthrough
CT: control target
= control target key end

     0   :  { %7 = vsyncpa [#allocation3], 0  ;;  %s709_s0 = inlined_call_operand.hbm [shape: f32[16,128], index: 0, kind: input, shape index: {}]   ;;  %s710_s1 = inlined_call_operand.hbm [shape: f32[16,128], index: 1, kind: input, shape index: {}]   ;;  %s711_s2 = inlined_call_operand.hbm [shape: f32[16,128], index: 2, kind: output, shape index: {}]  }
   0x1   :  { %9 = vsyncpa [#allocation3 + $0x1], 0 }
   0x2   :  { %10 = vsyncpa [#allocation6], 0 }
   0x3   :  { %12 = vsyncpa [#allocation6 + $0x1], 0 }
   0x4   :  { %13 = vsyncpa [#allocation4], 0 }
   0x5   :  { %15 = vsyncpa [#allocation4 + $0x1], 0  ;;  %s544_s9 = smov 0   ;;  %s546_s10 = smov 0  }
   0x6   :  { %s548_s11 = smov 0   ;;  %s550_s12 = smov 0  }
   0x7 LB: > { %s565_s13 = sadd.s32 4294967295, %s527_s12   ;;  %s329_s14 = sadd.s32 4294967294, %s527_s12   ;;  %s527_s12 = sphi %s550_s12, %s722_s12   ;;  %s523_s11 = sphi %s548_s11, %s721_s11   ;;  %s519_s10 = sphi %s546_s10, %s720_s10   ;;  %s515_s9 = sphi %s544_s9, %s719_s9  }
   0x8   : > { %s569_s15 = sadd.s32 1, %s527_s12   ;;  %s28_s16 = sadd.s32 1, %s523_s11 }
   0x9   : > { %s25_s17 = ssub.s32 %s527_s12, %s569_s15  ;;  %p35_p0 = scmp.ne.s32.totalorder %s523_s11, %s519_s10 }
   0xa   : > { %p26_p1 = scmp.eq.s32.totalorder %s25_s17, 0  ;;  %p36_p2 = scmp.eq.s32.totalorder %s527_s12, 0 }
   0xb   : > { %p41_p3 = scmp.ne.s32.totalorder %s519_s10, %s515_s9  ;;  %p42_p4 = scmp.eq.s32.totalorder %s565_s13, 0 }
   0xc   : > { %s581_s18 = scalar_select %p26_p1, %s523_s11, %s28_s16  }
   0xd   : > { %p583_p5 = por %p36_p2, %p35_p0  ;;  %p587_p6 = por %p42_p4, %p41_p3 }
   0xe   : > { %p91_p7 = scmp.eq.s32.totalorder %s565_s13, 1  ;;  %p97_p8 = scmp.eq.s32.totalorder %s329_s14, 1 }
   0xf   : > { %p361_p10 = scmp.lt.s32.totalorder %s527_s12, 2  ;;  %s603_s23 = sand.u32 1, %s523_s11  }
  0x10   : > { %p594_p11 = por %p91_p7, %p35_p0  ;;  %p598_p12 = por %p97_p8, %p41_p3 }
  0x11   : > { %s333_s24 = sshll.u32 %s527_s12, 3  ;;  %s332_s25 = sshll.u32 %s603_s23, 3 }
  0x12   : > { %s125_s28 = scalar_lea.hbm %s709_s0, %s333_s24  ;;  %s121_s30 = scalar_lea.vmem [#allocation2], %s332_s25 }
  0x13   : > { %s127_s29 = sshll.u32 %s125_s28, 4  ;;  %s129_s3 = sshll.u32 %s121_s30, 4  ;;  %s128_s29 = int_to_ptr.hbm [resolvable:$true] %s127_s29  ;;  %s130_s3 = int_to_ptr.vmem [resolvable:$true] %s129_s3 }
  0x14   : > { %p612_p13 = pnand %p361_p10, %p583_p5  ;;  %p336_p0 = scmp.ge.s32.totalorder %s527_s12, 1 }
  0x15   : > { %p153_p1 = scmp.lt.s32.totalorder %s527_s12, 3  ;;  %s118_s5 = scalar_lea.sflag [#allocation3], %s603_s23 }
  0x16   : > { %s397_s6 = sshra.s32 %s128_s29, 4  ;;  %p401_p3 = pneg %p612_p13  ;;  %s398_s6 = int_to_ptr.hbm [resolvable:$true] %s397_s6 }
  0x17   : > { %s399_s7 = scalar_lea.hbm %s398_s6, 8  ;;  %s404_s16 = scalar_lea.hbm %s709_s0, 16 }
  0x18   : > { %p400_p2 = scmp.ne.s32.totalorder %s398_s6, %s399_s7  ;;  %p405_p5 = scmp.lt.s32.totalorder %s398_s6, %s709_s0 }
  0x19   : > { %p406_p8 = scmp.lt.s32.totalorder %s404_s16, %s399_s7 }
  0x1a   : > { %p402_p4 = pnand %p401_p3, %p400_p2 }
  0x1b   : > { %p407_p10 = por %p406_p8, %p405_p5 }
  0x1c   : > { %p403_p7 = pneg %p402_p4 }
  0x1e   : > { %p408_p9 = pnand %p407_p10, %p403_p7 }
  0x20   : > { %411 = shalt.err (!%p408_p9)
}
  0x21   : > { %353 = dma.hbm_to_vmem [thread:$0]  (!%p612_p13), %s128_s29, 128, %s130_s3, %s118_s5  }
  0x22   : > { %p636_p2 = pnand %p336_p0, %p153_p1  ;;  %s144_s30 = scalar_lea.hbm %s710_s1, %s333_s24 }
  0x23   : > { %s146_s6 = sshll.u32 %s144_s30, 4  ;;  %s140_s7 = scalar_lea.vmem [#allocation5], %s332_s25  ;;  %s147_s6 = int_to_ptr.hbm [resolvable:$true] %s146_s6 }
  0x24   : > { %s148_s8 = sshll.u32 %s140_s7, 4  ;;  %s137_s14 = scalar_lea.sflag [#allocation6], %s603_s23  ;;  %s149_s8 = int_to_ptr.vmem [resolvable:$true] %s148_s8 }
  0x25   : > { %s427_s16 = sshra.s32 %s147_s6, 4  ;;  %s434_s5 = scalar_lea.hbm %s710_s1, 16  ;;  %s428_s16 = int_to_ptr.hbm [resolvable:$true] %s427_s16 }
  0x26   : > { %s429_s17 = scalar_lea.hbm %s428_s16, 8  ;;  %p435_p4 = scmp.lt.s32.totalorder %s428_s16, %s710_s1 }
  0x27   : > { %p430_p9 = scmp.ne.s32.totalorder %s428_s16, %s429_s17  ;;  %p436_p7 = scmp.lt.s32.totalorder %s434_s5, %s429_s17 }
  0x29   : > { %p432_p0 = pnand %p430_p9, %p401_p3  ;;  %p437_p5 = por %p436_p7, %p435_p4 }
  0x2b   : > { %p433_p1 = pneg %p432_p0 }
  0x2d   : > { %p438_p8 = pnand %p437_p5, %p433_p1 }
  0x2f   : > { %441 = shalt.err (!%p438_p8)
}
  0x30   : > { %356 = dma.hbm_to_vmem [thread:$0]  (!%p612_p13), %s147_s6, 128, %s149_s8, %s137_s14  }
  0x31   : > { %157 = sbr.rel (%p636_p2) target bundleno = 88 (0x58), region = 28  ;;  %s658_s23 = sand.u32 (!%p636_p2), 1, %s519_s10  }
  0x32   : > { %s661_s25 = sshll.u32 (!%p636_p2), %s658_s23, 3  ;;  %s160_s27 = scalar_lea.sflag (!%p636_p2), [#allocation3], %s658_s23 }
  0x33   : > { %s163_s28 = scalar_lea.vmem (!%p636_p2), [#allocation2], %s661_s25 }
  0x36   : > { %502 = dma.done.wait (%p587_p6), %s160_s27, 128  }
  0x37   : > { %504 = vsyncadd (%p587_p6), %s160_s27, 4294967168  ;;  %s170_s4 = scalar_lea.sflag [#allocation6], %s658_s23  ;;  %s173_s26 = scalar_lea.vmem [#allocation5], %s661_s25 }
  0x38   : > { %506 = dma.done.wait (%p587_p6), %s170_s4, 128  }
  0x39   : > { %508 = vsyncadd (%p587_p6), %s170_s4, 4294967168  ;;  %v200_v0 = vld [vmem:[%s163_s28] sm:$0xff]  ;;  %v201_v1 = vld [vmem:[%s173_s26] sm:$0xff]  ;;  %s341_s30 = sshll.u32 %s565_s13, 3  ;;  %s199_s8 = scalar_lea.vmem [#allocation7], %s661_s25 }
  0x3a   : > { %v202_v2 = vsub.f32 %v200_v0, %v201_v1  ;;  %s231_s20 = scalar_lea.hbm %s711_s2, %s341_s30  ;;  %s233_s14 = sshll.u32 %s199_s8, 4  ;;  %s234_s14 = int_to_ptr.vmem [resolvable:$true] %s233_s14 }
  0x3b   : > { %s235_s16 = sshll.u32 %s231_s20, 4  ;;  %s221_s13 = scalar_lea.sflag [#allocation4], %s658_s23  ;;  %s236_s16 = int_to_ptr.hbm [resolvable:$true] %s235_s16 }
  0x3c   : > { %v203_v3 = vmul.f32 %v202_v2, %v202_v2  ;;  %s471_s17 = sshra.s32 %s236_s16, 4  ;;  %s477_s19 = scalar_lea.hbm %s711_s2, 16  ;;  %s472_s17 = int_to_ptr.hbm [resolvable:$true] %s471_s17 }
  0x3d   : > { %s473_s29 = scalar_lea.hbm %s472_s17, 8  ;;  %p478_p10 = scmp.lt.s32.totalorder %s472_s17, %s711_s2 }
  0x3e   : > { %v204_v4 = vadd.f32 1e-06, %v203_v3  ;;  %p474_p6 = scmp.ne.s32.totalorder %s472_s17, %s473_s29  ;;  %p479_p2 = scmp.lt.s32.totalorder %s477_s19, %s473_s29 }
  0x40   : > { %395 = vrsqrt.f32 %v204_v4  ;;  %vm212_vm0 = vcmp.eq.f32.partialorder %v204_v4, inf  ;;  %v215_v11 = vand.u32 2147483648, %v204_v4  ;;  %vm214_vm1 = vcmp.eq.f32.partialorder %v204_v4, 0.0  ;;  %p475_p13 = pnand %p474_p6, %p594_p11  ;;  %p480_p9 = por %p479_p2, %p478_p10 }
  0x42   : > { %p476_p3 = pneg %p475_p13 }
  0x44   : > { %p481_p0 = pnand %p480_p9, %p476_p3 }
  0x46   : > { %v396_v5 = vpop.eup %395 }
  0x47   : > { %v206_v6 = vmul.f32 %v396_v5, %v204_v4 }
  0x49   : > { %v207_v7 = vmul.f32 %v396_v5, %v206_v6 }
  0x4b   : > { %v208_v8 = vmul.f32 0.5, %v207_v7 }
  0x4d   : > { %v209_v9 = vsub.f32 1.5, %v208_v8 }
  0x4f   : > { %v210_v10 = vmul.f32 %v396_v5, %v209_v9 }
  0x51   : > { %v211_v12 = vmul.f32 %v210_v10, %v204_v4 }
  0x53   : > { %v213_v13 = vsel %vm212_vm0, %v204_v4, %v211_v12 }
  0x54   : > { %v216_v14 = vsel %vm214_vm1, %v215_v11, %v213_v13 }
  0x55   : > { %219 = vst [vmem:[%s199_s8] sm:$0xff] %v216_v14 }
  0x56   : > { %484 = shalt.err (!%p481_p0)
}
  0x57   : > { %348 = dma.vmem_to_hbm [thread:$0]  (%p594_p11), %s234_s14, 128, %s236_s16, %s221_s13  }
  0x58 PF: > { %s247_s23 = sand.u32 1, %s515_s9   ;;  %p718_p1 = scmp.ge.s32.totalorder %s527_s12, 2 }
  0x59   : > { %s248_s27 = scalar_lea.sflag [#allocation4], %s247_s23 }
  0x5a   : > { %p358_p4 = pnand %p718_p1, %p598_p12 }
  0x5c   : > { %p359_p7 = pneg %p358_p4 }
  0x5e   : > { %510 = dma.done.wait (%p359_p7), %s248_s27, 128  }
  0x5f   : > { %512 = vsyncadd (%p359_p7), %s248_s27, 4294967168  ;;  %p18_p5 = scmp.ge.s32.totalorder %s569_s15, 4   ;;  %s719_s9 = smov %s519_s10 }
  0x60   : > { %s720_s10 = smov %s523_s11  ;;  %s721_s11 = smov %s581_s18 }
  0x61   : > { %s722_s12 = smov %s569_s15  ;;  %20 = sbr.rel (!%p18_p5) target bundleno = 7 (0x7), region = 86 }
  0x66   :  { %254 = vsyncpa [#allocation3], 1 }
  0x67   :  { %256 = vsyncpa [#allocation3 + $0x1], 1 }
  0x68   :  { %257 = vsyncpa [#allocation6], 1 }
  0x69   :  { %259 = vsyncpa [#allocation6 + $0x1], 1 }
  0x6a   :  { %260 = vsyncpa [#allocation4], 1 }
  0x6b   :  { %262 = vsyncpa [#allocation4 + $0x1], 1 }

</bundles_post_ra>
